<compile_context>
chip_gen: v5e
topology: v5e:2x2
jax: 0.10.0
libtpu: 0.0.40
codegen_flags: <defaults>
</compile_context>

<pallas_src>
import functools

import jax
import jax.numpy as jnp
from jax.experimental import pallas as pl
from jax.experimental.pallas import tpu as pltpu


# ----------------------------- kernels ------------------------------------ #

def _dlinear_cols_kernel(w_ref, bias_ref, x_ref, o_ref):
    """Columnar tile: w (H, Lag), bias (H, 1), x (Lag, TN), o (H, TN)."""
    o_ref[...] = (
        jnp.dot(w_ref[...], x_ref[...], preferred_element_type=jnp.float32)
        + bias_ref[...]
    ).astype(o_ref.dtype)


def _dlinear_batch_kernel(w_ref, bias_ref, x_ref, o_ref):
    """Batch tile: w (H, Lag), bias (H, 1), x (TB, Lag, C), o (TB, H, C).  C = lane axis."""
    for b in range(x_ref.shape[0]):  # TB is a small, static tile size
        o_ref[b] = (
            jnp.dot(w_ref[...], x_ref[b], preferred_element_type=jnp.float32)
            + bias_ref[...]
        ).astype(o_ref.dtype)


# ----------------------------- helpers ------------------------------------ #

def _cdiv(a: int, b: int) -> int:
    return -(-a // b)


def _round_up(x: int, m: int) -> int:
    return _cdiv(x, m) * m


def _build_moving_avg_matrix(lag: int, kernel_size: int) -> jnp.ndarray:
    """(Lag, Lag) matrix A with (A @ x)[t] = replicate-padded moving average at t."""
    pad = (kernel_size - 1) // 2
    idx = jnp.clip(
        jnp.arange(lag)[:, None] + jnp.arange(kernel_size)[None, :] - pad, 0, lag - 1
    )
    rows = jnp.broadcast_to(jnp.arange(lag)[:, None], idx.shape)
    return jnp.zeros((lag, lag), jnp.float32).at[rows, idx].add(1.0 / kernel_size)


def _resident_spec(block_shape, index_map, single_buffer: bool) -> pl.BlockSpec:
    """BlockSpec for a grid-invariant (VMEM-resident) operand; single-buffer it if supported."""
    if single_buffer and hasattr(pl, "Buffered"):
        try:
            return pl.BlockSpec(block_shape, index_map, pipeline_mode=pl.Buffered(1))
        except TypeError:  # older jax without pipeline_mode on BlockSpec
            pass
    return pl.BlockSpec(block_shape, index_map)


def _choose_tile_cols(n, lag, h, *, tn_max, min_steps, vmem_budget_bytes, elem_bytes):
    """Pick a lane tile width TN (multiple of 128) for the columnar path."""
    tn_max = max(128, (int(tn_max) // 128) * 128)  # validate: must be a 128-multiple
    # Double-buffered x + out tiles dominate per-step VMEM.
    per_col = 2 * (_round_up(lag, 8) + _round_up(h, 8)) * elem_bytes
    tn_cap = max(128, min(tn_max, (vmem_budget_bytes // max(per_col, 1)) // 128 * 128))
    n128 = _round_up(max(n, 1), 128)
    target_steps = min(min_steps, n128 // 128)
    best = None
    for tn in range(128, min(tn_cap, n128) + 1, 128):
        steps = _cdiv(n128, tn)
        padding = steps * tn - n128
        key = (steps < target_steps, padding, -tn)  # meet step target, then min pad, then widest
        if best is None or key < best[0]:
            best = (key, tn)
    return best[1]


def _choose_tile_batch(b, lag, h, c, *, min_steps, vmem_budget_bytes, elem_bytes):
    """Pick a batch tile TB for the wide-channel path."""
    per_batch = 2 * (_round_up(lag, 8) + _round_up(h, 8)) * _round_up(c, 128) * elem_bytes
    tb_cap = max(1, vmem_budget_bytes // max(per_batch, 1))
    target_steps = min(min_steps, b)
    best = None
    for tb in range(1, min(tb_cap, b, 1024) + 1):
        steps = _cdiv(b, tb)
        padding = steps * tb - b
        key = (steps < target_steps, padding, -tb)
        if best is None or key < best[0]:
            best = (key, tb)
    return best[1]


def _vmem_limit_bytes(est_bytes: int) -> int:
    # Explicit scoped-VMEM request (feedback: never rely on the per-generation defaults).
    return int(min(max(est_bytes + (4 << 20), 32 << 20), 48 << 20))


# --------------------------- pallas wrappers ------------------------------- #

def dlinear_apply_columns(x_cols, w_eff, bias, *, tn_max=2048, min_steps=4,
                          vmem_budget_bytes=16 << 20, single_buffer_params=True):
    """Columnar entry point: x_cols (Lag, N) -> (H, N); columns index (batch, channel) pairs.

    Pipelines that can produce / consume this layout directly avoid the two wrapper-side HBM
    transposes that the (B, Lag, C) module interface otherwise forces for small C.
    """
    lag, n = x_cols.shape
    h = w_eff.shape[0]
    eb = jnp.dtype(x_cols.dtype).itemsize

    tn = _choose_tile_cols(n, lag, h, tn_max=tn_max, min_steps=min_steps,
                           vmem_budget_bytes=vmem_budget_bytes, elem_bytes=eb)
    n_pad = _round_up(n, tn)
    if n_pad != n:
        x_cols = jnp.pad(x_cols, ((0, 0), (0, n_pad - n)))

    est = (_round_up(h, 8) * _round_up(lag, 128) * eb * 2          # weight (worst case 2 bufs)
           + _round_up(h, 8) * 128 * 4 * 2                          # bias
           + _round_up(lag, 8) * tn * eb * 2                        # x tiles (double-buffered)
           + _round_up(h, 8) * tn * eb * 2)                         # out tiles (double-buffered)

    out_cols = pl.pallas_call(
        _dlinear_cols_kernel,
        out_shape=jax.ShapeDtypeStruct((h, n_pad), x_cols.dtype),
        grid_spec=pltpu.PrefetchScalarGridSpec(
            num_scalar_prefetch=0,
            grid=(n_pad // tn,),
            in_specs=[
                _resident_spec((h, lag), lambda j: (0, 0), single_buffer_params),
                _resident_spec((h, 1), lambda j: (0, 0), single_buffer_params),
                pl.BlockSpec((lag, tn), lambda j: (0, j)),
            ],
            out_specs=pl.BlockSpec((h, tn), lambda j: (0, j)),
        ),
        compiler_params=pltpu.CompilerParams(
            dimension_semantics=("parallel",),
            vmem_limit_bytes=_vmem_limit_bytes(est),
        ),
    )(w_eff, bias, x_cols)
    return out_cols[:, :n] if n_pad != n else out_cols


def _dlinear_batched(x, w_eff, bias, *, min_steps, vmem_budget_bytes, single_buffer_params):
    """Wide-channel path: x (B, Lag, C) -> (B, H, C) with no wrapper relayouts."""
    b, lag, c = x.shape
    h = w_eff.shape[0]
    eb = jnp.dtype(x.dtype).itemsize

    tb = _choose_tile_batch(b, lag, h, c, min_steps=min_steps,
                            vmem_budget_bytes=vmem_budget_bytes, elem_bytes=eb)
    b_pad = _round_up(b, tb)
    if b_pad != b:
        x = jnp.pad(x, ((0, b_pad - b), (0, 0), (0, 0)))

    est = (_round_up(h, 8) * _round_up(lag, 128) * eb * 2
           + _round_up(h, 8) * 128 * 4 * 2
           + tb * _round_up(lag, 8) * _round_up(c, 128) * eb * 2
           + tb * _round_up(h, 8) * _round_up(c, 128) * eb * 2)

    out = pl.pallas_call(
        _dlinear_batch_kernel,
        out_shape=jax.ShapeDtypeStruct((b_pad, h, c), x.dtype),
        grid_spec=pltpu.PrefetchScalarGridSpec(
            num_scalar_prefetch=0,
            grid=(b_pad // tb,),
            in_specs=[
                _resident_spec((h, lag), lambda i: (0, 0), single_buffer_params),
                _resident_spec((h, 1), lambda i: (0, 0), single_buffer_params),
                pl.BlockSpec((tb, lag, c), lambda i: (i, 0, 0)),
            ],
            out_specs=pl.BlockSpec((tb, h, c), lambda i: (i, 0, 0)),
        ),
        compiler_params=pltpu.CompilerParams(
            dimension_semantics=("parallel",),
            vmem_limit_bytes=_vmem_limit_bytes(est),
        ),
    )(w_eff, bias, x)
    return out[:b] if b_pad != b else out


@functools.partial(
    jax.jit,
    static_argnames=("kernel_size", "tn_max", "min_steps", "vmem_budget_bytes",
                     "stream_dtype", "single_buffer_params"),
)
def dlinear_forward(x, ws, bs, wt, bt, *, kernel_size, tn_max=2048, min_steps=4,
                    vmem_budget_bytes=16 << 20, stream_dtype=None,
                    single_buffer_params=True):
    """x: (B, Lag, C) -> (B, Horizon, C), matching DLinear.forward (individual=False)."""
    if kernel_size % 2 != 1:
        raise ValueError("DLinear moving average requires an odd kernel_size.")
    b, lag, c = x.shape
    h = ws.shape[0]
    stream = jnp.dtype(stream_dtype) if stream_dtype is not None else jnp.dtype(x.dtype)

    # ---- one-time parameter fusion in f32 (plain JAX glue, outside the hot loop) ----
    avg_mat = _build_moving_avg_matrix(lag, kernel_size)                    # (Lag, Lag)
    ws32, wt32 = ws.astype(jnp.float32), wt.astype(jnp.float32)
    w_eff = (ws32 + jnp.dot(wt32 - ws32, avg_mat)).astype(stream)           # (H, Lag)
    bias = (bs + bt).reshape(h, 1).astype(jnp.float32)                      # (H, 1), add stays f32

    x = x.astype(stream)  # optional bf16 streaming: cast before any relayout

    if c >= 128:
        # Wide channels: consume (B, Lag, C) / produce (B, H, C) directly, C = lane axis.
        return _dlinear_batched(x, w_eff, bias, min_steps=min_steps,
                                vmem_budget_bytes=vmem_budget_bytes,
                                single_buffer_params=single_buffer_params)

    # Small channel count: lane-dense columnar layout (columns = (batch, channel) pairs).
    # The (B, Lag, C) module interface forces one relayout per side here; callers that can
    # work in the columnar layout should use dlinear_apply_columns directly.
    n = b * c
    x_cols = jnp.transpose(x, (1, 0, 2)).reshape(lag, n)                    # (Lag, B*C)
    out_cols = dlinear_apply_columns(
        x_cols, w_eff, bias, tn_max=tn_max, min_steps=min_steps,
        vmem_budget_bytes=vmem_budget_bytes, single_buffer_params=single_buffer_params)
    return jnp.transpose(out_cols.reshape(h, b, c), (1, 0, 2))              # (B, H, C)


# ----------------------------- reference ----------------------------------- #

def _reference_forward(x, ws, bs, wt, bt, kernel_size):
    """Pure-JAX reference reproducing the PyTorch forward (individual=False)."""
    pad = (kernel_size - 1) // 2
    front = jnp.repeat(x[:, 0:1, :], pad, axis=1)
    end = jnp.repeat(x[:, -1:, :], pad, axis=1)
    xp = jnp.concatenate([front, x, end], axis=1)
    windows = jnp.stack(
        [xp[:, j: j + x.shape[1], :] for j in range(kernel_size)], axis=0)
    trend = jnp.mean(windows, axis=0)
    seasonal = x - trend
    s_out = jnp.einsum("blc,hl->bch", seasonal, ws) + bs[None, None, :]
    t_out = jnp.einsum("blc,hl->bch", trend, wt) + bt[None, None, :]
    return jnp.transpose(s_out + t_out, (0, 2, 1))


# ------------------------------- test -------------------------------------- #

def _run_forward(x, ws, bs, wt, bt, kernel_size, **kw):
    """Run the Pallas forward; if single-buffered resident params (pl.Buffered(1)) are not
    supported by this jax/libtpu build, fall back to the default double-buffered specs."""
    try:
        return jax.block_until_ready(
            dlinear_forward(x, ws, bs, wt, bt, kernel_size=kernel_size, **kw))
    except Exception:
        return jax.block_until_ready(
            dlinear_forward(x, ws, bs, wt, bt, kernel_size=kernel_size,
                            single_buffer_params=False, **kw))


if __name__ == "__main__":
    key = jax.random.PRNGKey(0)
    k1, k2, k3, k4, k5 = jax.random.split(key, 5)

    def make_params(lag, horizon, ka, kb):
        # Module __init__: weights = (1/Lag) * ones([Horizon, Lag]); biases keep nn.Linear's
        # default uniform init -> deterministic PRNG here.
        bound = 1.0 / (lag ** 0.5)
        ws = jnp.full((horizon, lag), 1.0 / lag, jnp.float32)
        wt = jnp.full((horizon, lag), 1.0 / lag, jnp.float32)
        bs = jax.random.uniform(ka, (horizon,), jnp.float32, -bound, bound)
        bt = jax.random.uniform(kb, (horizon,), jnp.float32, -bound, bound)
        return ws, bs, wt, bt

    K = 5  # odd kernel_size, as DLinear requires

    # --- 1) small-C columnar path: B=2, Lag=16, C=4, Horizon=8 ---
    B, Lag, H, C = 2, 16, 8, 4
    x = jax.random.normal(k1, (B, Lag, C), jnp.float32)
    ws, bs, wt, bt = make_params(Lag, H, k2, k3)
    out = _run_forward(x, ws, bs, wt, bt, K)
    ref = _reference_forward(x, ws, bs, wt, bt, K)
    assert out.shape == (B, H, C)
    assert jnp.allclose(out, ref, atol=1e-5, rtol=1e-5), "columnar path mismatch"

    # --- 2) wide-C batch-tiled path (no wrapper relayouts): B=4, Lag=16, C=128, Horizon=8 ---
    B2, Lag2, H2, C2 = 4, 16, 8, 128
    x2 = jax.random.normal(k4, (B2, Lag2, C2), jnp.float32)
    ws2, bs2, wt2, bt2 = make_params(Lag2, H2, k5, k2)
    out2 = _run_forward(x2, ws2, bs2, wt2, bt2, K)
    ref2 = _reference_forward(x2, ws2, bs2, wt2, bt2, K)
    assert out2.shape == (B2, H2, C2)
    assert jnp.allclose(out2, ref2, atol=1e-5, rtol=1e-5), "batched path mismatch"

    # --- 3) optional bf16 streaming (halves HBM bytes; looser tolerance) ---
    out3 = _run_forward(x, ws, bs, wt, bt, K, stream_dtype=jnp.bfloat16)
    assert out3.dtype == jnp.bfloat16
    assert jnp.allclose(out3.astype(jnp.float32), ref, atol=5e-2, rtol=5e-2), "bf16 mismatch"

    print("KERNEL_OK")
</pallas_src>

<mosaic_0001>
module attributes {stable_mosaic.version = 11 : i64} {
  func.func @_dlinear_cols_kernel(%arg0: i32, %arg1: memref<8x16xf32, #tpu.memory_space<vmem>>, %arg2: memref<8x1xf32, #tpu.memory_space<vmem>>, %arg3: memref<16x128xf32, #tpu.memory_space<vmem>>, %arg4: memref<8x128xf32, #tpu.memory_space<vmem>>) attributes {dimension_semantics = [#tpu.dimension_semantics<parallel>], iteration_bounds = array<i64: 1>, scalar_prefetch = 0 : i64, scratch_operands = 0 : i64, tpu.core_type = #tpu.core_type<tc>, window_params = [{pipeline_mode = #tpu.pipeline_mode<synchronous>, transform_indices = @transform_0, window_bounds = array<i64: 8, 16>}, {pipeline_mode = #tpu.pipeline_mode<synchronous>, transform_indices = @transform_1, window_bounds = array<i64: 8, 1>}, {transform_indices = @transform_2, window_bounds = array<i64: 16, 128>}, {transform_indices = @transform_3, window_bounds = array<i64: 8, 128>}]} {
    %c0 = arith.constant 0 : index
    %c0_0 = arith.constant 0 : index
    %0 = vector.load %arg1[%c0, %c0_0] : memref<8x16xf32, #tpu.memory_space<vmem>>, vector<8x16xf32>
    %c0_1 = arith.constant 0 : index
    %c0_2 = arith.constant 0 : index
    %1 = vector.load %arg3[%c0_1, %c0_2] : memref<16x128xf32, #tpu.memory_space<vmem>>, vector<16x128xf32>
    %cst = arith.constant dense<0.000000e+00> : vector<8x128xf32>
    %2 = tpu.matmul %0, %1, %cst {dimension_numbers = #tpu.dot_dimension_numbers<[1], [0], [0], [1], [0, 0, 1, 1], [], []>} : vector<8x16xf32>, vector<16x128xf32>, vector<8x128xf32> -> vector<8x128xf32>
    %c0_3 = arith.constant 0 : index
    %c0_4 = arith.constant 0 : index
    %3 = vector.load %arg2[%c0_3, %c0_4] : memref<8x1xf32, #tpu.memory_space<vmem>>, vector<8x1xf32>
    %4 = vector.broadcast %3 : vector<8x1xf32> to vector<8x128xf32>
    %5 = arith.addf %2, %4 : vector<8x128xf32>
    %c0_5 = arith.constant 0 : index
    %c0_6 = arith.constant 0 : index
    %6 = vector.load %arg4[%c0_5, %c0_6] : memref<8x128xf32, #tpu.memory_space<vmem>>, vector<8x128xf32>
    tpu.vector_store %arg4[%c0_5, %c0_6], %5 {strides = array<i32>} : memref<8x128xf32, #tpu.memory_space<vmem>>, vector<8x128xf32>,
    return
  }
  func.func @transform_0(%arg0: i32) -> (i32, i32) {
    %c0_i32 = arith.constant 0 : i32
    %c0_i32_0 = arith.constant 0 : i32
    %c0_i32_1 = arith.constant 0 : i32
    return %c0_i32, %c0_i32_0 : i32, i32
  }
  func.func @transform_1(%arg0: i32) -> (i32, i32) {
    %c0_i32 = arith.constant 0 : i32
    %c0_i32_0 = arith.constant 0 : i32
    %c0_i32_1 = arith.constant 0 : i32
    return %c0_i32, %c0_i32_0 : i32, i32
  }
  func.func @transform_2(%arg0: i32) -> (i32, i32) {
    %c0_i32 = arith.constant 0 : i32
    %c0_i32_0 = arith.constant 0 : i32
    return %c0_i32, %arg0 : i32, i32
  }
  func.func @transform_3(%arg0: i32) -> (i32, i32) {
    %c0_i32 = arith.constant 0 : i32
    %c0_i32_0 = arith.constant 0 : i32
    return %c0_i32, %arg0 : i32, i32
  }
}

module attributes {stable_mosaic.version = 11 : i64} {
  func.func @_dlinear_cols_kernel(%arg0: i32, %arg1: memref<8x16xf32, #tpu.memory_space<vmem>>, %arg2: memref<8x1xf32, #tpu.memory_space<vmem>>, %arg3: memref<16x128xf32, #tpu.memory_space<vmem>>, %arg4: memref<8x128xf32, #tpu.memory_space<vmem>>) attributes {dimension_semantics = [#tpu.dimension_semantics<parallel>], iteration_bounds = array<i64: 1>, scalar_prefetch = 0 : i64, scratch_operands = 0 : i64, tpu.core_type = #tpu.core_type<tc>, window_params = [{pipeline_mode = #tpu.pipeline_mode<synchronous>, transform_indices = @transform_0, window_bounds = array<i64: 8, 16>}, {pipeline_mode = #tpu.pipeline_mode<synchronous>, transform_indices = @transform_1, window_bounds = array<i64: 8, 1>}, {transform_indices = @transform_2, window_bounds = array<i64: 16, 128>}, {transform_indices = @transform_3, window_bounds = array<i64: 8, 128>}]} {
    %c0 = arith.constant 0 : index
    %c0_0 = arith.constant 0 : index
    %0 = vector.load %arg1[%c0, %c0_0] : memref<8x16xf32, #tpu.memory_space<vmem>>, vector<8x16xf32>
    %c0_1 = arith.constant 0 : index
    %c0_2 = arith.constant 0 : index
    %1 = vector.load %arg3[%c0_1, %c0_2] : memref<16x128xf32, #tpu.memory_space<vmem>>, vector<16x128xf32>
    %cst = arith.constant dense<0.000000e+00> : vector<8x128xf32>
    %2 = tpu.matmul %0, %1, %cst {dimension_numbers = #tpu.dot_dimension_numbers<[1], [0], [0], [1], [0, 0, 1, 1], [], []>} : vector<8x16xf32>, vector<16x128xf32>, vector<8x128xf32> -> vector<8x128xf32>
    %c0_3 = arith.constant 0 : index
    %c0_4 = arith.constant 0 : index
    %3 = vector.load %arg2[%c0_3, %c0_4] : memref<8x1xf32, #tpu.memory_space<vmem>>, vector<8x1xf32>
    %4 = vector.broadcast %3 : vector<8x1xf32> to vector<8x128xf32>
    %5 = arith.addf %2, %4 : vector<8x128xf32>
    %c0_5 = arith.constant 0 : index
    %c0_6 = arith.constant 0 : index
    %6 = vector.load %arg4[%c0_5, %c0_6] : memref<8x128xf32, #tpu.memory_space<vmem>>, vector<8x128xf32>
    tpu.vector_store %arg4[%c0_5, %c0_6], %5 {strides = array<i32>} : memref<8x128xf32, #tpu.memory_space<vmem>>, vector<8x128xf32>,
    return
  }
  func.func @transform_0(%arg0: i32) -> (i32, i32) {
    %c0_i32 = arith.constant 0 : i32
    %c0_i32_0 = arith.constant 0 : i32
    %c0_i32_1 = arith.constant 0 : i32
    return %c0_i32, %c0_i32_0 : i32, i32
  }
  func.func @transform_1(%arg0: i32) -> (i32, i32) {
    %c0_i32 = arith.constant 0 : i32
    %c0_i32_0 = arith.constant 0 : i32
    %c0_i32_1 = arith.constant 0 : i32
    return %c0_i32, %c0_i32_0 : i32, i32
  }
  func.func @transform_2(%arg0: i32) -> (i32, i32) {
    %c0_i32 = arith.constant 0 : i32
    %c0_i32_0 = arith.constant 0 : i32
    return %c0_i32, %arg0 : i32, i32
  }
  func.func @transform_3(%arg0: i32) -> (i32, i32) {
    %c0_i32 = arith.constant 0 : i32
    %c0_i32_0 = arith.constant 0 : i32
    return %c0_i32, %arg0 : i32, i32
  }
}

</mosaic_0001>

<bundles_post_ra>
// kernel: dlinear_forward.1
= control target key start
LH: loop header
LB: loop body
LE: loop exit
PB: predicated region body
PF: predicated region fallthrough
CT: control target
= control target key end

     0   :  { %v55_v2 = vmov 0   ;;  %vm23_vm0 = vcmask 130048   ;;  %s91_s2 = inlined_call_operand.vmem [shape: f32[16,128], index: 2, kind: input, shape index: {}]   ;;  %s92_s0 = inlined_call_operand.vmem [shape: f32[8,16], index: 0, kind: input, shape index: {}]   ;;  %s93_s1 = inlined_call_operand.vmem [shape: f32[8,1], index: 1, kind: input, shape index: {}]   ;;  %s94_s3 = inlined_call_operand.vmem [shape: f32[8,128], index: 3, kind: output, shape index: {}]  }
   0x1   :  { %v16_v0 = vld [vmem:[%s91_s2 + $0x8] sm:$0xff]  ;;  %v15_v1 = vld [vmem:[%s91_s2] sm:$0xff]  ;;  %54 = vset.pattern.permute.xlu0 %v55_v2 }
   0x2   :  { %41 = vmatpush.msra.mxu0 %v16_v0  ;;  %v14_v3 = vld [vmem:[%s92_s0] sm:$0xff] }
   0x3   :  { %v17_v4 = vld [vmem:[%s93_s1] sm:$0xff] }
   0x4   :  { %20 = vperm.xlu0 %54, %v17_v4   ;;  %42 = vmatpush.msra.mxu0 %v15_v1 }
   0x5   :  { %52 = vmatmul.msk.f32.vlgmr.msra.gmra.mxu0 %vm23_vm0, %v14_v3 }
  0x76   :  { %v21_v5 = vpop.permute.xlu0 %20 }
  0x82   :  { %v44_v6 = vpop.f32.mrf.mxu0 }
  0x83   :  { %v45_v7 = vadd.f32 %v44_v6, %v21_v5 }
  0x85   :  { %47 = vst [vmem:[%s94_s3] sm:$0xff] %v45_v7 }

// kernel: dlinear_forward.1
= control target key start
LH: loop header
LB: loop body
LE: loop exit
PB: predicated region body
PF: predicated region fallthrough
CT: control target
= control target key end

     0   :  { %v55_v2 = vmov 0   ;;  %vm23_vm0 = vcmask 130048   ;;  %s91_s2 = inlined_call_operand.vmem [shape: f32[16,128], index: 2, kind: input, shape index: {}]   ;;  %s92_s0 = inlined_call_operand.vmem [shape: f32[8,16], index: 0, kind: input, shape index: {}]   ;;  %s93_s1 = inlined_call_operand.vmem [shape: f32[8,1], index: 1, kind: input, shape index: {}]   ;;  %s94_s3 = inlined_call_operand.vmem [shape: f32[8,128], index: 3, kind: output, shape index: {}]  }
   0x1   :  { %v16_v0 = vld [vmem:[%s91_s2 + $0x8] sm:$0xff]  ;;  %v15_v1 = vld [vmem:[%s91_s2] sm:$0xff]  ;;  %54 = vset.pattern.permute.xlu0 %v55_v2 }
   0x2   :  { %41 = vmatpush.msra.mxu0 %v16_v0  ;;  %v14_v3 = vld [vmem:[%s92_s0] sm:$0xff] }
   0x3   :  { %v17_v4 = vld [vmem:[%s93_s1] sm:$0xff] }
   0x4   :  { %20 = vperm.xlu0 %54, %v17_v4   ;;  %42 = vmatpush.msra.mxu0 %v15_v1 }
   0x5   :  { %52 = vmatmul.msk.f32.vlgmr.msra.gmra.mxu0 %vm23_vm0, %v14_v3 }
  0x76   :  { %v21_v5 = vpop.permute.xlu0 %20 }
  0x82   :  { %v44_v6 = vpop.f32.mrf.mxu0 }
  0x83   :  { %v45_v7 = vadd.f32 %v44_v6, %v21_v5 }
  0x85   :  { %47 = vst [vmem:[%s94_s3] sm:$0xff] %v45_v7 }

</bundles_post_ra>
